<compile_context>
chip_gen: v7x
topology: tpu7x:2x2x1
jax: 0.10.0
libtpu: 0.0.40
codegen_flags: <defaults>
</compile_context>

<pallas_src>
import jax
import jax.numpy as jnp
from jax.experimental import pallas as pl
from jax.experimental.pallas import tpu as pltpu


# ----------------------------- kernel ---------------------------------------


def _gate2_kernel(xpd_ref, a1_ref, a2_ref,
                  wpd_ref, wa1_ref, wa2_ref,
                  bg_ref, bt_ref, bs1_ref, bs2_ref,
                  out_ref):
    tn = out_ref.shape[1]

    # Three fused MXU matmuls (bf16 operands, f32 accumulation).
    y1 = jnp.dot(xpd_ref[...], wpd_ref[...], preferred_element_type=jnp.float32)
    y2 = jnp.dot(a1_ref[...], wa1_ref[...], preferred_element_type=jnp.float32)
    y3 = jnp.dot(a2_ref[...], wa2_ref[...], preferred_element_type=jnp.float32)

    # Static, lane-aligned slices (tn is a multiple of 128).  f32 epilogue.
    g = y1[:, :tn] + y2[:, :tn] + bg_ref[...]      # gate pre-activation
    t = y1[:, tn:] + bt_ref[...]                   # target_proj
    s1 = y2[:, tn:] + bs1_ref[...]                 # source1_proj
    s2 = y3 + bs2_ref[...]                         # source2_proj

    out_ref[...] = jnp.tanh(t + jax.nn.sigmoid(g) * s1 + s2).astype(out_ref.dtype)


# ----------------------------- wrapper ---------------------------------------


def _interleave_cols(a, b, tn):
    """[K, O], [K, O] -> [K, 2*O] where each TN-wide output block j is [a_j | b_j]."""
    k, o = a.shape
    nb = o // tn
    return jnp.concatenate(
        [a.reshape(k, nb, tn), b.reshape(k, nb, tn)], axis=2).reshape(k, 2 * o)


def source_context_gate2(prev_emb, dec_state, attn1, attn2, params):
    B, E = prev_emb.shape
    D = dec_state.shape[1]
    A1 = attn1.shape[1]
    A2 = attn2.shape[1]
    O = params["wt"].shape[1]
    assert O % 128 == 0  # TODO(synk): pad O to a multiple of 128 for odd output sizes.

    # Tile sizes: lane tile TN | O (multiple of 128), sublane tile TM | padded batch.
    TN = next(t for t in (512, 256, 128) if O % t == 0)
    TM = 256 if B >= 256 else ((B + 7) // 8) * 8
    Bp = ((B + TM - 1) // TM) * TM

    # --- one-time weight prep: K-fuse prev|dec, N-pack gate with target / source1. ---
    # (In production, do this once at parameter-load time rather than per decode step.)
    wg, wt, ws1, ws2 = params["wg"], params["wt"], params["ws1"], params["ws2"]
    w_pd = _interleave_cols(wg[:E + D], wt, TN).astype(jnp.bfloat16)    # [E+D, 2O]
    w_a1 = _interleave_cols(wg[E + D:], ws1, TN).astype(jnp.bfloat16)   # [A1,  2O]
    w_a2 = ws2.astype(jnp.bfloat16)                                     # [A2,   O]
    bg, bt, bs1, bs2 = params["bg"], params["bt"], params["bs1"], params["bs2"]

    # --- activation prep: K-concat, pad batch to a sublane multiple, cast to bf16. ---
    x_pd = jnp.concatenate([prev_emb, dec_state], axis=1)

    def prep(x):
        if Bp != B:
            x = jnp.pad(x, ((0, Bp - B), (0, 0)))
        return x.astype(jnp.bfloat16)

    x_pd, a1, a2 = prep(x_pd), prep(attn1), prep(attn2)

    # O tiles outer, batch tiles inner: weight blocks stay VMEM-resident across batch.
    grid = (O // TN, Bp // TM)

    # Rough double-buffered VMEM footprint -> explicit limit with headroom (<= 60 MiB
    # so the plan also fits v7x's 64 MiB per-TC VMEM).
    est = 2 * (TM * (E + D + A1 + A2) * 2
               + ((E + D) + A1) * 2 * TN * 2 + A2 * TN * 2
               + 4 * TN * 4 + TM * TN * 4)
    vmem_limit = int(min(60 * 2 ** 20, max(32 * 2 ** 20, 2 * est)))

    out = pl.pallas_call(
        _gate2_kernel,
        out_shape=jax.ShapeDtypeStruct((Bp, O), jnp.float32),
        grid_spec=pltpu.PrefetchScalarGridSpec(
            num_scalar_prefetch=0,
            grid=grid,
            in_specs=[
                pl.BlockSpec((TM, E + D), lambda j, i: (i, 0)),     # x_pd
                pl.BlockSpec((TM, A1), lambda j, i: (i, 0)),        # attn1
                pl.BlockSpec((TM, A2), lambda j, i: (i, 0)),        # attn2
                pl.BlockSpec((E + D, 2 * TN), lambda j, i: (0, j)),  # W_pd (packed)
                pl.BlockSpec((A1, 2 * TN), lambda j, i: (0, j)),     # W_a1 (packed)
                pl.BlockSpec((A2, TN), lambda j, i: (0, j)),         # W_a2
                pl.BlockSpec((1, TN), lambda j, i: (0, j)),          # bg
                pl.BlockSpec((1, TN), lambda j, i: (0, j)),          # bt
                pl.BlockSpec((1, TN), lambda j, i: (0, j)),          # bs1
                pl.BlockSpec((1, TN), lambda j, i: (0, j)),          # bs2
            ],
            out_specs=pl.BlockSpec((TM, TN), lambda j, i: (i, j)),
        ),
        compiler_params=pltpu.CompilerParams(
            dimension_semantics=("parallel", "parallel"),
            vmem_limit_bytes=vmem_limit,
        ),
    )(x_pd, a1, a2, w_pd, w_a1, w_a2, bg, bt, bs1, bs2)

    return out[:B] if Bp != B else out


# ----------------------------- test harness ----------------------------------


def make_params(key, E, D, A1, A2, O):
    ks = jax.random.split(key, 8)
    scale = 0.05
    return {
        "wg":  scale * jax.random.normal(ks[0], (E + D + A1, O), jnp.float32),
        "bg":  scale * jax.random.normal(ks[1], (1, O), jnp.float32),
        "ws1": scale * jax.random.normal(ks[2], (A1, O), jnp.float32),
        "bs1": scale * jax.random.normal(ks[3], (1, O), jnp.float32),
        "ws2": scale * jax.random.normal(ks[4], (A2, O), jnp.float32),
        "bs2": scale * jax.random.normal(ks[5], (1, O), jnp.float32),
        "wt":  scale * jax.random.normal(ks[6], (E + D, O), jnp.float32),
        "bt":  scale * jax.random.normal(ks[7], (1, O), jnp.float32),
    }


def reference(prev_emb, dec_state, attn1, attn2, p):
    x1 = jnp.concatenate([prev_emb, dec_state, attn1], axis=1)
    z1 = jax.nn.sigmoid(x1 @ p["wg"] + p["bg"])
    s1 = attn1 @ p["ws1"] + p["bs1"]
    s2 = attn2 @ p["ws2"] + p["bs2"]
    xt = jnp.concatenate([prev_emb, dec_state], axis=1)
    t = xt @ p["wt"] + p["bt"]
    return jnp.tanh(t + z1 * s1 + s2)


if __name__ == "__main__":
    # attn1_size == attn2_size (required by ContextGate2's shared gate layer).
    B, E, D, A1, A2, O = 8, 16, 32, 32, 32, 128

    key = jax.random.PRNGKey(0)
    k_in, k_p = jax.random.split(key)
    k1, k2, k3, k4 = jax.random.split(k_in, 4)

    prev_emb = jax.random.normal(k1, (B, E), jnp.float32)
    dec_state = jax.random.normal(k2, (B, D), jnp.float32)
    attn1 = jax.random.normal(k3, (B, A1), jnp.float32)
    attn2 = jax.random.normal(k4, (B, A2), jnp.float32)

    params = make_params(k_p, E, D, A1, A2, O)

    out = source_context_gate2(prev_emb, dec_state, attn1, attn2, params)
    out = jax.block_until_ready(out)

    ref = reference(prev_emb, dec_state, attn1, attn2, params)
    assert out.shape == (B, O)
    max_err = float(jnp.max(jnp.abs(out - ref)))
    # bf16 MXU operands with f32 accumulation -> relaxed tolerance vs the f32 reference.
    assert max_err < 2e-2, f"max abs error {max_err}"

    print("KERNEL_OK")
</pallas_src>

<mosaic_0001>
module attributes {stable_mosaic.version = 11 : i64} {
  func.func @_gate2_kernel(%arg0: i32, %arg1: i32, %arg2: memref<8x48xbf16, #tpu.memory_space<vmem>>, %arg3: memref<8x32xbf16, #tpu.memory_space<vmem>>, %arg4: memref<8x32xbf16, #tpu.memory_space<vmem>>, %arg5: memref<48x256xbf16, #tpu.memory_space<vmem>>, %arg6: memref<32x256xbf16, #tpu.memory_space<vmem>>, %arg7: memref<32x128xbf16, #tpu.memory_space<vmem>>, %arg8: memref<1x128xf32, #tpu.memory_space<vmem>>, %arg9: memref<1x128xf32, #tpu.memory_space<vmem>>, %arg10: memref<1x128xf32, #tpu.memory_space<vmem>>, %arg11: memref<1x128xf32, #tpu.memory_space<vmem>>, %arg12: memref<8x128xf32, #tpu.memory_space<vmem>>) attributes {dimension_semantics = [#tpu.dimension_semantics<parallel>, #tpu.dimension_semantics<parallel>], iteration_bounds = array<i64: 1, 1>, scalar_prefetch = 0 : i64, scratch_operands = 0 : i64, tpu.core_type = #tpu.core_type<tc>, window_params = [{transform_indices = @transform_0, window_bounds = array<i64: 8, 48>}, {transform_indices = @transform_1, window_bounds = array<i64: 8, 32>}, {transform_indices = @transform_2, window_bounds = array<i64: 8, 32>}, {transform_indices = @transform_3, window_bounds = array<i64: 48, 256>}, {transform_indices = @transform_4, window_bounds = array<i64: 32, 256>}, {transform_indices = @transform_5, window_bounds = array<i64: 32, 128>}, {transform_indices = @transform_6, window_bounds = array<i64: 1, 128>}, {transform_indices = @transform_7, window_bounds = array<i64: 1, 128>}, {transform_indices = @transform_8, window_bounds = array<i64: 1, 128>}, {transform_indices = @transform_9, window_bounds = array<i64: 1, 128>}, {transform_indices = @transform_10, window_bounds = array<i64: 8, 128>}]} {
    %c0 = arith.constant 0 : index
    %c0_0 = arith.constant 0 : index
    %0 = vector.load %arg2[%c0, %c0_0] : memref<8x48xbf16, #tpu.memory_space<vmem>>, vector<8x48xbf16>
    %c0_1 = arith.constant 0 : index
    %c0_2 = arith.constant 0 : index
    %1 = vector.load %arg5[%c0_1, %c0_2] : memref<48x256xbf16, #tpu.memory_space<vmem>>, vector<48x256xbf16>
    %cst = arith.constant dense<0.000000e+00> : vector<8x256xf32>
    %2 = tpu.matmul %0, %1, %cst {dimension_numbers = #tpu.dot_dimension_numbers<[1], [0], [0], [1], [0, 0, 1, 1], [], []>} : vector<8x48xbf16>, vector<48x256xbf16>, vector<8x256xf32> -> vector<8x256xf32>
    %c0_3 = arith.constant 0 : index
    %c0_4 = arith.constant 0 : index
    %3 = vector.load %arg3[%c0_3, %c0_4] : memref<8x32xbf16, #tpu.memory_space<vmem>>, vector<8x32xbf16>
    %c0_5 = arith.constant 0 : index
    %c0_6 = arith.constant 0 : index
    %4 = vector.load %arg6[%c0_5, %c0_6] : memref<32x256xbf16, #tpu.memory_space<vmem>>, vector<32x256xbf16>
    %cst_7 = arith.constant dense<0.000000e+00> : vector<8x256xf32>
    %5 = tpu.matmul %3, %4, %cst_7 {dimension_numbers = #tpu.dot_dimension_numbers<[1], [0], [0], [1], [0, 0, 1, 1], [], []>} : vector<8x32xbf16>, vector<32x256xbf16>, vector<8x256xf32> -> vector<8x256xf32>
    %c0_8 = arith.constant 0 : index
    %c0_9 = arith.constant 0 : index
    %6 = vector.load %arg4[%c0_8, %c0_9] : memref<8x32xbf16, #tpu.memory_space<vmem>>, vector<8x32xbf16>
    %c0_10 = arith.constant 0 : index
    %c0_11 = arith.constant 0 : index
    %7 = vector.load %arg7[%c0_10, %c0_11] : memref<32x128xbf16, #tpu.memory_space<vmem>>, vector<32x128xbf16>
    %cst_12 = arith.constant dense<0.000000e+00> : vector<8x128xf32>
    %8 = tpu.matmul %6, %7, %cst_12 {dimension_numbers = #tpu.dot_dimension_numbers<[1], [0], [0], [1], [0, 0, 1, 1], [], []>} : vector<8x32xbf16>, vector<32x128xbf16>, vector<8x128xf32> -> vector<8x128xf32>
    %9 = vector.extract_strided_slice %2 {offsets = [0, 0], sizes = [8, 128], strides = [1, 1]} : vector<8x256xf32> to vector<8x128xf32>
    %10 = vector.extract_strided_slice %5 {offsets = [0, 0], sizes = [8, 128], strides = [1, 1]} : vector<8x256xf32> to vector<8x128xf32>
    %11 = arith.addf %9, %10 : vector<8x128xf32>
    %c0_13 = arith.constant 0 : index
    %c0_14 = arith.constant 0 : index
    %12 = vector.load %arg8[%c0_13, %c0_14] : memref<1x128xf32, #tpu.memory_space<vmem>>, vector<1x128xf32>
    %13 = vector.broadcast %12 : vector<1x128xf32> to vector<8x128xf32>
    %14 = arith.addf %11, %13 : vector<8x128xf32>
    %15 = vector.extract_strided_slice %2 {offsets = [0, 128], sizes = [8, 128], strides = [1, 1]} : vector<8x256xf32> to vector<8x128xf32>
    %c0_15 = arith.constant 0 : index
    %c0_16 = arith.constant 0 : index
    %16 = vector.load %arg9[%c0_15, %c0_16] : memref<1x128xf32, #tpu.memory_space<vmem>>, vector<1x128xf32>
    %17 = vector.broadcast %16 : vector<1x128xf32> to vector<8x128xf32>
    %18 = arith.addf %15, %17 : vector<8x128xf32>
    %19 = vector.extract_strided_slice %5 {offsets = [0, 128], sizes = [8, 128], strides = [1, 1]} : vector<8x256xf32> to vector<8x128xf32>
    %c0_17 = arith.constant 0 : index
    %c0_18 = arith.constant 0 : index
    %20 = vector.load %arg10[%c0_17, %c0_18] : memref<1x128xf32, #tpu.memory_space<vmem>>, vector<1x128xf32>
    %21 = vector.broadcast %20 : vector<1x128xf32> to vector<8x128xf32>
    %22 = arith.addf %19, %21 : vector<8x128xf32>
    %c0_19 = arith.constant 0 : index
    %c0_20 = arith.constant 0 : index
    %23 = vector.load %arg11[%c0_19, %c0_20] : memref<1x128xf32, #tpu.memory_space<vmem>>, vector<1x128xf32>
    %24 = vector.broadcast %23 : vector<1x128xf32> to vector<8x128xf32>
    %25 = arith.addf %8, %24 : vector<8x128xf32>
    %26 = arith.negf %14 : vector<8x128xf32>
    %27 = math.exp %26 : vector<8x128xf32>
    %cst_21 = arith.constant 1.000000e+00 : f32
    %28 = vector.broadcast %cst_21 : f32 to vector<8x128xf32>
    %29 = arith.addf %28, %27 : vector<8x128xf32>
    %30 = arith.divf %28, %29 : vector<8x128xf32>
    %31 = arith.mulf %30, %22 : vector<8x128xf32>
    %32 = arith.addf %18, %31 : vector<8x128xf32>
    %33 = arith.addf %32, %25 : vector<8x128xf32>
    %34 = math.tanh %33 : vector<8x128xf32>
    %c0_22 = arith.constant 0 : index
    %c0_23 = arith.constant 0 : index
    %35 = vector.load %arg12[%c0_22, %c0_23] : memref<8x128xf32, #tpu.memory_space<vmem>>, vector<8x128xf32>
    tpu.vector_store %arg12[%c0_22, %c0_23], %34 {strides = array<i32>} : memref<8x128xf32, #tpu.memory_space<vmem>>, vector<8x128xf32>,
    return
  }
  func.func @transform_0(%arg0: i32, %arg1: i32) -> (i32, i32) {
    %c0_i32 = arith.constant 0 : i32
    %c0_i32_0 = arith.constant 0 : i32
    return %arg1, %c0_i32 : i32, i32
  }
  func.func @transform_1(%arg0: i32, %arg1: i32) -> (i32, i32) {
    %c0_i32 = arith.constant 0 : i32
    %c0_i32_0 = arith.constant 0 : i32
    return %arg1, %c0_i32 : i32, i32
  }
  func.func @transform_2(%arg0: i32, %arg1: i32) -> (i32, i32) {
    %c0_i32 = arith.constant 0 : i32
    %c0_i32_0 = arith.constant 0 : i32
    return %arg1, %c0_i32 : i32, i32
  }
  func.func @transform_3(%arg0: i32, %arg1: i32) -> (i32, i32) {
    %c0_i32 = arith.constant 0 : i32
    %c0_i32_0 = arith.constant 0 : i32
    return %c0_i32, %arg0 : i32, i32
  }
  func.func @transform_4(%arg0: i32, %arg1: i32) -> (i32, i32) {
    %c0_i32 = arith.constant 0 : i32
    %c0_i32_0 = arith.constant 0 : i32
    return %c0_i32, %arg0 : i32, i32
  }
  func.func @transform_5(%arg0: i32, %arg1: i32) -> (i32, i32) {
    %c0_i32 = arith.constant 0 : i32
    %c0_i32_0 = arith.constant 0 : i32
    return %c0_i32, %arg0 : i32, i32
  }
  func.func @transform_6(%arg0: i32, %arg1: i32) -> (i32, i32) {
    %c0_i32 = arith.constant 0 : i32
    %c0_i32_0 = arith.constant 0 : i32
    return %c0_i32, %arg0 : i32, i32
  }
  func.func @transform_7(%arg0: i32, %arg1: i32) -> (i32, i32) {
    %c0_i32 = arith.constant 0 : i32
    %c0_i32_0 = arith.constant 0 : i32
    return %c0_i32, %arg0 : i32, i32
  }
  func.func @transform_8(%arg0: i32, %arg1: i32) -> (i32, i32) {
    %c0_i32 = arith.constant 0 : i32
    %c0_i32_0 = arith.constant 0 : i32
    return %c0_i32, %arg0 : i32, i32
  }
  func.func @transform_9(%arg0: i32, %arg1: i32) -> (i32, i32) {
    %c0_i32 = arith.constant 0 : i32
    %c0_i32_0 = arith.constant 0 : i32
    return %c0_i32, %arg0 : i32, i32
  }
  func.func @transform_10(%arg0: i32, %arg1: i32) -> (i32, i32) {
    %c0_i32 = arith.constant 0 : i32
    return %arg1, %arg0 : i32, i32
  }
}

</mosaic_0001>

<bundles_post_ra>
// kernel: tpu_custom_call.1
= control target key start
LH: loop header
LB: loop body
LE: loop exit
PB: predicated region body
PF: predicated region fallthrough
CT: control target
= control target key end

     0   :  { %15 = vsyncpa [#allocation3], 0  ;;  %s747_s0 = inlined_call_operand.hbm [shape: bf16[8,48], index: 0, kind: input, shape index: {}]   ;;  %s748_s1 = inlined_call_operand.hbm [shape: bf16[8,32], index: 1, kind: input, shape index: {}]   ;;  %s749_s2 = inlined_call_operand.hbm [shape: bf16[8,32], index: 2, kind: input, shape index: {}]   ;;  %s750_s3 = inlined_call_operand.hbm [shape: bf16[48,256], index: 3, kind: input, shape index: {}]   ;;  %s751_s4 = inlined_call_operand.hbm [shape: bf16[32,256], index: 4, kind: input, shape index: {}]   ;;  %s752_s5 = inlined_call_operand.vmem [shape: bf16[32,128], index: 5, kind: input, shape index: {}]   ;;  %s753_s6 = inlined_call_operand.vmem [shape: f32[1,128], index: 6, kind: input, shape index: {}]   ;;  %s754_s7 = inlined_call_operand.vmem [shape: f32[1,128], index: 7, kind: input, shape index: {}]   ;;  %s755_s8 = inlined_call_operand.vmem [shape: f32[1,128], index: 8, kind: input, shape index: {}]   ;;  %s756_s9 = inlined_call_operand.vmem [shape: f32[1,128], index: 9, kind: input, shape index: {}]   ;;  %s757_s10 = inlined_call_operand.hbm [shape: f32[8,128], index: 10, kind: output, shape index: {}]  }
   0x1   :  { %16 = vsyncpa [#allocation6], 0 }
   0x2   :  { %17 = vsyncpa [#allocation9], 0 }
   0x3   :  { %18 = vsyncpa [#allocation4], 0  ;;  %s576_s13 = smov [#allocation5]   ;;  %s577_s15 = smov [#allocation8]  }
   0x4   :  { %s35_s14 = sshll.u32 %s576_s13, 4  ;;  %s54_s16 = sshll.u32 %s577_s15, 4  ;;  %s36_s14 = int_to_ptr.vmem [resolvable:$true] %s35_s14  ;;  %s642_s16 = int_to_ptr.vmem [resolvable:$true] %s54_s16 }
   0x5   :  { %s436_s19 = scalar_lea.hbm %s748_s1, 64 }
   0x6   :  { %p437_p0 = scmp.ne.s32.totalorder %s748_s1, %s436_s19  ;;  %p440_p1 = scmp.lt.u32.totalorder %s436_s19, %s748_s1 }
   0x8   :  { %p442_p2 = pnand %p440_p1, %p437_p0 }
   0xa   :  { %445 = shalt.err (!%p442_p2)
}
   0xb   :  { %s446_s24 = scalar_lea.vmem %s36_s14, 64  ;;  %p451_p4 = scmp.lt.s32.totalorder %s36_s14, %s36_s14 }
   0xc   :  { %p447_p3 = scmp.ne.s32.totalorder %s36_s14, %s446_s24  ;;  %p452_p5 = scmp.lt.s32.totalorder %s446_s24, %s446_s24 }
   0xe   :  { %p453_p6 = por %p452_p5, %p451_p4 }
  0x10   :  { %p454_p7 = pnand %p453_p6, %p447_p3 }
  0x12   :  { %457 = shalt.err (!%p454_p7)
}
  0x13   :  { %38 = dma.hbm_to_vmem [thread:$0]  %s748_s1, 64, %s36_s14, [#allocation6]  }
  0x14   :  { %s458_s29 = scalar_lea.hbm %s750_s3, 768 }
  0x15   :  { %p459_p8 = scmp.ne.s32.totalorder %s750_s3, %s458_s29  ;;  %p462_p9 = scmp.lt.u32.totalorder %s458_s29, %s750_s3 }
  0x17   :  { %p464_p10 = pnand %p462_p9, %p459_p8 }
  0x19   :  { %467 = shalt.err (!%p464_p10)
}
  0x1a   :  { %s468_s15 = scalar_lea.vmem %s642_s16, 768  ;;  %p473_p12 = scmp.lt.s32.totalorder %s642_s16, %s642_s16 }
  0x1b   :  { %p469_p11 = scmp.ne.s32.totalorder %s642_s16, %s468_s15  ;;  %p474_p13 = scmp.lt.s32.totalorder %s468_s15, %s468_s15 }
  0x1d   :  { %p475_p0 = por %p474_p13, %p473_p12 }
  0x1f   :  { %p476_p1 = pnand %p475_p0, %p469_p11 }
  0x21   :  { %479 = shalt.err (!%p476_p1)
}
  0x22   :  { %s578_s1 = smov 128   ;;  %s579_s14 = smov 8  }
  0x23   :  { %60 = dma.hbm_to_vmem [thread:$0]  %s750_s3, 768, %s642_s16, [#allocation9], %s578_s1, %s578_s1, %s579_s14  }
  0x24   :  { %s580_s19 = smov [#allocation2]   ;;  %s581_s21 = smov [#allocation7]  }
  0x25   :  { %s25_s20 = sshll.u32 %s580_s19, 4  ;;  %s45_s22 = sshll.u32 %s581_s21, 4  ;;  %s26_s20 = int_to_ptr.vmem [resolvable:$true] %s25_s20  ;;  %s46_s22 = int_to_ptr.vmem [resolvable:$true] %s45_s22 }
  0x26   :  { %s480_s25 = scalar_lea.hbm %s747_s0, 64 }
  0x27   :  { %p481_p2 = scmp.ne.s32.totalorder %s747_s0, %s480_s25  ;;  %p484_p3 = scmp.lt.u32.totalorder %s480_s25, %s747_s0 }
  0x29   :  { %p486_p4 = pnand %p484_p3, %p481_p2 }
  0x2b   :  { %489 = shalt.err (!%p486_p4)
}
  0x2c   :  { %s490_s3 = scalar_lea.vmem %s26_s20, 64  ;;  %p495_p6 = scmp.lt.s32.totalorder %s26_s20, %s26_s20 }
  0x2d   :  { %p491_p5 = scmp.ne.s32.totalorder %s26_s20, %s490_s3  ;;  %p496_p7 = scmp.lt.s32.totalorder %s490_s3, %s490_s3 }
  0x2f   :  { %p497_p8 = por %p496_p7, %p495_p6 }
  0x31   :  { %p498_p9 = pnand %p497_p8, %p491_p5 }
  0x33   :  { %501 = shalt.err (!%p498_p9)
}
  0x34   :  { %28 = dma.hbm_to_vmem [thread:$0]  %s747_s0, 64, %s26_s20, [#allocation3]  }
  0x35   :  { %s502_s13 = scalar_lea.hbm %s749_s2, 64 }
  0x36   :  { %p503_p10 = scmp.ne.s32.totalorder %s749_s2, %s502_s13  ;;  %p506_p11 = scmp.lt.u32.totalorder %s502_s13, %s749_s2 }
  0x38   :  { %p508_p12 = pnand %p506_p11, %p503_p10 }
  0x3a   :  { %511 = shalt.err (!%p508_p12)
}
  0x3b   :  { %s512_s21 = scalar_lea.vmem %s46_s22, 64  ;;  %p517_p0 = scmp.lt.s32.totalorder %s46_s22, %s46_s22 }
  0x3c   :  { %p513_p13 = scmp.ne.s32.totalorder %s46_s22, %s512_s21  ;;  %p518_p1 = scmp.lt.s32.totalorder %s512_s21, %s512_s21 }
  0x3e   :  { %p519_p2 = por %p518_p1, %p517_p0 }
  0x40   :  { %p520_p3 = pnand %p519_p2, %p513_p13 }
  0x42   :  { %523 = shalt.err (!%p520_p3)
}
  0x43   :  { %48 = dma.hbm_to_vmem [thread:$0]  %s749_s2, 64, %s46_s22, [#allocation6]  }
  0x44   :  { %s582_s23 = smov [#allocation10]   ;;  %s524_s27 = scalar_lea.hbm %s751_s4, 512 }
  0x45   :  { %s66_s24 = sshll.u32 %s582_s23, 4  ;;  %p525_p4 = scmp.ne.s32.totalorder %s751_s4, %s524_s27  ;;  %s67_s24 = int_to_ptr.vmem [resolvable:$true] %s66_s24 }
  0x46   :  { %p528_p5 = scmp.lt.u32.totalorder %s524_s27, %s751_s4 }
  0x48   :  { %p530_p6 = pnand %p528_p5, %p525_p4 }
  0x4a   :  { %533 = shalt.err (!%p530_p6)
}
  0x4b   :  { %s534_s30 = scalar_lea.vmem %s67_s24, 512  ;;  %p539_p8 = scmp.lt.s32.totalorder %s67_s24, %s67_s24 }
  0x4c   :  { %p535_p7 = scmp.ne.s32.totalorder %s67_s24, %s534_s30  ;;  %p540_p9 = scmp.lt.s32.totalorder %s534_s30, %s534_s30 }
  0x4e   :  { %p541_p10 = por %p540_p9, %p539_p8 }
  0x50   :  { %p542_p11 = pnand %p541_p10, %p535_p7 }
  0x52   :  { %545 = shalt.err (!%p542_p11)
}
  0x53   :  { %72 = dma.hbm_to_vmem [thread:$0]  %s751_s4, 512, %s67_s24, [#allocation9], %s578_s1, %s578_s1, %s579_s14  }
  0x54   :  { %568 = dma.done.wait [#allocation3], 64  }
  0x55   :  { %569 = vsyncadd [#allocation3], 4294967232 }
  0x56   :  { %570 = dma.done.wait [#allocation6], 128  }
  0x57   :  { %571 = vsyncadd [#allocation6], 4294967168 }
  0x58   :  { %572 = dma.done.wait [#allocation9], 1280  }
  0x59   :  { %573 = vsyncadd [#allocation9], 4294966016  ;;  %v583_v0 = vmov 0   ;;  %v413_v1 = vld [vmem:[#allocation8 + $0x4] ss:$8 sps:$4 sm:$0xff]   ;;  %vm206_vm0 = vcmask 261120  }
  0x5a   :  { %242 = vmatprep.mubr.bf16.mxu1 %v583_v0  ;;  %172 = vmatprep.mubr.bf16.mxu0 %v583_v0  ;;  %v415_v2 = vld [vmem:[#allocation8] ss:$8 sps:$4 sm:$0xff]   ;;  %v416_v3 = vld [vmem:[#allocation10 + $0x4] ss:$8 sps:$4 sm:$0xff]   ;;  %v418_v4 = vld [vmem:[#allocation10] ss:$8 sps:$4 sm:$0xff]  }
  0x5b   :  { %140 = vmatprep.subr.bf16.mxu0 %v413_v1  ;;  %v419_v5 = vld [vmem:[#allocation8 + $0x14] ss:$8 sps:$4 sm:$0xff]   ;;  %v421_v6 = vld [vmem:[#allocation8 + $0x10] ss:$8 sps:$4 sm:$0xff]   ;;  %210 = vmatprep.subr.bf16.mxu1 %v416_v3  ;;  %v422_v7 = vld [vmem:[#allocation10 + $0x14] ss:$8 sps:$4 sm:$0xff]  }
  0x5c   :  { %141 = vmatpush1.bf16.msra.mxu0 %v415_v2  ;;  %211 = vmatpush1.bf16.msra.mxu1 %v418_v4  ;;  %v424_v8 = vld [vmem:[#allocation10 + $0x10] ss:$8 sps:$4 sm:$0xff]   ;;  %v425_v9 = vld [vmem:[#allocation8 + $0x24] ss:$8 sps:$4 sm:$0xff]   ;;  %v181_v11 = vld [vmem:[#allocation5] sm:$0xf] }
  0x5d   :  { %142 = vmatprep.subr.bf16.mxu0 %v419_v5  ;;  %212 = vmatprep.subr.bf16.mxu1 %v422_v7  ;;  %v427_v10 = vld [vmem:[#allocation8 + $0x20] ss:$8 sps:$4 sm:$0xff]   ;;  %v584_v13 = vmov 0.0   ;;  %v99_v14 = vld [vmem:[#allocation2] sm:$0xf]  ;;  %vm136_vm1 = vcmask 392192  }
  0x5e   :  { %v428_v12 = vld [vmem:[%s752_s5] sm:$0xff]   ;;  %v429_v15 = vld [vmem:[%s752_s5 + $0x8] sm:$0xff]   ;;  %vm585_vm2 = vmmov 0   ;;  %v251_v16 = vld [vmem:[#allocation7] sm:$0xf]  ;;  %s586_s21 = smov [#allocation11]  }
  0x5f   :  { %v383_v21 = vld [vmem:[%s753_s6] ss:$0 sm:$0xff]  ;;  %s360_s0 = sshll.u32 %s586_s21, 4  ;;  %s361_s0 = int_to_ptr.vmem [resolvable:$true] %s360_s0 }
  0x60   :  { %143 = vmatpush1.bf16.msra.mxu0 %v421_v6  ;;  %213 = vmatpush1.bf16.msra.mxu1 %v424_v8  ;;  %v385_v35 = vld [vmem:[%s755_s8] ss:$0 sm:$0xff]  ;;  %s546_s8 = scalar_lea.vmem %s361_s0, 128  ;;  %p551_p13 = scmp.lt.s32.totalorder %s361_s0, %s361_s0 }
  0x61   :  { %144 = vmatprep.subr.bf16.mxu0 %v425_v9  ;;  %394 = vmatprep.subr.bf16.mxu1 %v584_v13  ;;  %v384_v36 = vld [vmem:[%s754_s7] ss:$0 sm:$0xff]  ;;  %p547_p12 = scmp.ne.s32.totalorder %s361_s0, %s546_s8  ;;  %p552_p0 = scmp.lt.s32.totalorder %s546_s8, %s546_s8 }
  0x62   :  { %v386_v37 = vld [vmem:[%s756_s9] ss:$0 sm:$0xff] }
  0x63   :  { %382 = vmatmul.mubr.msk.bf16.vlgmr.msra.gmra.mrb[0].mxu1 %vm206_vm0, %v181_v11  ;;  %p553_p1 = por %p552_p0, %p551_p13 }
  0x64   :  { %145 = vmatpush1.bf16.msra.mxu0 %v427_v10  ;;  %395 = vmatpush3.bf16.msra.mxu1 %v428_v12 }
  0x65   :  { %398 = vmatprep.mubr.msk.bf16.mxu1 %vm585_vm2, %v584_v13  ;;  %396 = vmatprep.subr.bf16.mxu1 %v584_v13  ;;  %p554_p2 = pnand %p553_p1, %p547_p12 }
  0x67   :  { %377 = vmatmul.mubr.msk.bf16.vlgmr.msra.gmra.mrb[0].mxu0 %vm136_vm1, %v99_v14 }
  0x68   :  { %397 = vmatpush3.bf16.msra.mxu1 %v429_v15 }
  0x6b   :  { %399 = vmatmul.mubr.msk.bf16.vlgmr.msra.gmra.mrb[4].mxu1 %vm206_vm0, %v251_v16 }
 0x136   :  { %v244_v17 = vpop.f32.mrb[0].mxu1 }
 0x137   :  { %v246_v18 = vpop.f32.mrb[1].mxu1 }
 0x138   :  { %v248_v19 = vpop.f32.mrb[2].mxu1  ;;  %v280_v38 = vadd.f32 %v385_v35, %v246_v18 }
 0x139   :  { %v249_v23 = vpop.f32.mrb[3].mxu1 }
 0x13a   :  { %v174_v20 = vpop.f32.mrb[0].mxu0 }
 0x13b   :  { %v256_v22 = vadd.f32 %v244_v17, %v174_v20  ;;  %v176_v24 = vpop.f32.mrb[1].mxu0 }
 0x13c   :  { %v178_v25 = vpop.f32.mrb[2].mxu0  ;;  %v272_v40 = vadd.f32 %v384_v36, %v176_v24 }
 0x13d   :  { %v264_v26 = vadd.f32 %v383_v21, %v256_v22  ;;  %v179_v27 = vpop.f32.mrb[3].mxu0 }
 0x13e   :  { %v337_v29 = vpop.f32.mrb[4].mxu1 }
 0x13f   :  { %v390_v28 = vmul.f32 -1.442695, %v264_v26  ;;  %v400_v30 = vpop.f32.mrb[5].mxu1  ;;  %v338_v42 = vadd.f32 %v386_v37, %v337_v29 }
 0x140   :  { %v340_v31 = vpop.f32.mrb[6].mxu1 }
 0x141   :  { %430 = vpow2.f32 %v390_v28  ;;  %v401_v32 = vpop.f32.mrb[7].mxu1 }
 0x14b   :  { %v431_v33 = vpop.eup %430 }
 0x14c   :  { %v346_v34 = vadd.f32 1.0, %v431_v33 }
 0x14e   :  { %432 = vrcp.f32 %v346_v34 }
 0x158   :  { %v433_v39 = vpop.eup %432 }
 0x159   :  { %v349_v41 = vmul.f32 %v433_v39, %v280_v38 }
 0x15b   :  { %v350_v43 = vadd.f32 %v349_v41, %v272_v40 }
 0x15d   :  { %v351_v44 = vadd.f32 %v350_v43, %v338_v42 }
 0x15f   :  { %434 = vtanh.f32 %v351_v44 }
 0x169   :  { %v435_v45 = vpop.eup %434 }
 0x16a   :  { %353 = vst [vmem:[#allocation11] sm:$0xff] %v435_v45 }
 0x16b   :  { %557 = shalt.err (!%p554_p2)
}
 0x16c   :  { %s558_s20 = scalar_lea.hbm %s757_s10, 128 }
 0x16d   :  { %p559_p3 = scmp.ne.s32.totalorder %s757_s10, %s558_s20  ;;  %p562_p4 = scmp.lt.u32.totalorder %s558_s20, %s757_s10 }
 0x16f   :  { %p564_p5 = pnand %p562_p4, %p559_p3 }
 0x171   :  { %567 = shalt.err (!%p564_p5)
}
 0x172   :  { %363 = dma.vmem_to_hbm [thread:$0]  %s361_s0, 128, %s757_s10, [#allocation4]  }
 0x173   :  { %574 = dma.done.wait [#allocation4], 128  }
 0x174   :  { %575 = vsyncadd [#allocation4], 4294967168 }
 0x175   :  { %367 = vsyncpa [#allocation3], 1 }
 0x176   :  { %368 = vsyncpa [#allocation6], 1 }
 0x177   :  { %369 = vsyncpa [#allocation9], 1 }
 0x178   :  { %370 = vsyncpa [#allocation4], 1 }

</bundles_post_ra>
